<compile_context>
chip_gen: v5e
topology: v5e:2x2
jax: 0.10.0
libtpu: 0.0.40
codegen_flags: <defaults>
</compile_context>

<pallas_src>
import functools

import jax
import jax.numpy as jnp
from jax.experimental import pallas as pl
from jax.experimental.pallas import tpu as pltpu

BN_EPS = 1e-5


def _round_up(n, m):
    return ((n + m - 1) // m) * m


# ------------------------------------------------------------------ pass 1 --
def _stats_kernel(x_ref, w1_ref, b1_ref, w2_ref, b2_ref,
                  sum_ref, sq_ref, *, block_b, true_b, n_tiles, needs_mask):
    """Per-tile BatchNorm partial statistics: sum(h2), sum(h2*h2) over the tile."""
    # Linear(input_dim, 128) + ReLU  -- bf16 MXU operands, f32 accumulation.
    h1 = jnp.dot(x_ref[...], w1_ref[...],
                 preferred_element_type=jnp.float32) + b1_ref[...]
    h1 = jnp.maximum(h1, 0.0)

    # Linear(128, 256)
    h2 = jnp.dot(h1.astype(jnp.bfloat16), w2_ref[...],
                 preferred_element_type=jnp.float32) + b2_ref[...]

    def write(h):
        sum_ref[...] = jnp.sum(h, axis=0, keepdims=True)[None]
        sq_ref[...] = jnp.sum(h * h, axis=0, keepdims=True)[None]

    if not needs_mask:
        write(h2)
    else:
        i = pl.program_id(0)

        # Zero-padded rows would contribute relu(b1)@W2 + b2 to the stats;
        # only the last tile can contain padded rows.
        @pl.when(i != n_tiles - 1)
        def _():
            write(h2)

        @pl.when(i == n_tiles - 1)
        def _():
            row = i * block_b + jax.lax.broadcasted_iota(jnp.int32, (block_b, 1), 0)
            write(h2 * (row < true_b).astype(jnp.float32))


# ------------------------------------------------------------------ pass 2 --
def _out_kernel(x_ref, w1_ref, b1_ref, w2_ref, b2_ref,
                scale_ref, shift_ref, w3_ref, b3_ref, o_ref):
    """Recompute h1/h2 from x, apply BatchNorm affine + ReLU, final Linear."""
    h1 = jnp.dot(x_ref[...], w1_ref[...],
                 preferred_element_type=jnp.float32) + b1_ref[...]
    h1 = jnp.maximum(h1, 0.0)

    h2 = jnp.dot(h1.astype(jnp.bfloat16), w2_ref[...],
                 preferred_element_type=jnp.float32) + b2_ref[...]

    # BatchNorm (whole-batch training-mode stats, folded into scale/shift) + ReLU.
    h2n = jnp.maximum(h2 * scale_ref[...] + shift_ref[...], 0.0)

    # Linear(256, output_dim_padded) -- bf16 MXU operands, f32 accumulation.
    o_ref[...] = jnp.dot(h2n.astype(jnp.bfloat16), w3_ref[...],
                         preferred_element_type=jnp.float32) + b3_ref[...]


# ------------------------------------------------------------------ wrapper -
def mlp_forward(x, params, *, block_b=None):
    """Forward pass; Linear weights stored as [in, out] (x @ W + b)."""
    w1, b1, w2, b2, gamma, beta, w3, b3 = params
    B, in_dim = x.shape
    h1_dim = w1.shape[1]          # 128
    h2_dim = w2.shape[1]          # 256
    out_dim = w3.shape[1]

    # Batch tile: multiple of 16 rows (bf16 sublane packing), capped at 1024.
    if block_b is None:
        block_b = min(1024, _round_up(B, 16))
    b_pad = _round_up(B, block_b)
    out_pad = _round_up(out_dim, 128)          # lane-dense output stores
    n_tiles = b_pad // block_b
    needs_mask = b_pad != B

    # Pre-cast streamed x and resident weights to bf16 once; pad as needed.
    x_p = x if b_pad == B else jnp.pad(x, ((0, b_pad - B), (0, 0)))
    x_bf = x_p.astype(jnp.bfloat16)
    w1_bf = w1.astype(jnp.bfloat16)
    w2_bf = w2.astype(jnp.bfloat16)
    w3_p = w3 if out_pad == out_dim else jnp.pad(w3, ((0, 0), (0, out_pad - out_dim)))
    w3_bf = w3_p.astype(jnp.bfloat16)
    b3_p = b3 if out_pad == out_dim else jnp.pad(b3, ((0, 0), (0, out_pad - out_dim)))

    const = lambda i: (0, 0)
    row = lambda i: (i, 0)
    vmem_limit = 32 * 1024 * 1024

    # ---- pass 1: per-tile BatchNorm partial sums / sumsqs ------------------
    stats_cost = pl.CostEstimate(
        flops=2 * b_pad * (in_dim * h1_dim + h1_dim * h2_dim) + 4 * b_pad * h2_dim,
        transcendentals=0,
        bytes_accessed=(2 * (b_pad * in_dim + in_dim * h1_dim + h1_dim * h2_dim)
                        + 4 * (h1_dim + h2_dim)
                        + 4 * 2 * n_tiles * h2_dim),
    )
    psum, psq = pl.pallas_call(
        functools.partial(_stats_kernel, block_b=block_b, true_b=B,
                          n_tiles=n_tiles, needs_mask=needs_mask),
        grid=(n_tiles,),
        in_specs=[
            pl.BlockSpec((block_b, in_dim), row),    # x tile (bf16, streamed)
            pl.BlockSpec((in_dim, h1_dim), const),   # W1 (bf16, resident)
            pl.BlockSpec((1, h1_dim), const),        # b1 (f32)
            pl.BlockSpec((h1_dim, h2_dim), const),   # W2 (bf16, resident)
            pl.BlockSpec((1, h2_dim), const),        # b2 (f32)
        ],
        out_specs=[
            pl.BlockSpec((1, 1, h2_dim), lambda i: (i, 0, 0)),   # per-tile sum
            pl.BlockSpec((1, 1, h2_dim), lambda i: (i, 0, 0)),   # per-tile sumsq
        ],
        out_shape=[
            jax.ShapeDtypeStruct((n_tiles, 1, h2_dim), jnp.float32),
            jax.ShapeDtypeStruct((n_tiles, 1, h2_dim), jnp.float32),
        ],
        compiler_params=pltpu.CompilerParams(
            dimension_semantics=("parallel",),       # per-tile partials: no carry
            vmem_limit_bytes=vmem_limit,
        ),
        cost_estimate=stats_cost,
    )(x_bf, w1_bf, b1, w2_bf, b2)

    # Tiny cross-tile reduction + fold of BatchNorm (training-mode, biased var)
    # into a single scale/shift pair -- [*, 256] f32 XLA ops, negligible.
    total = jnp.sum(psum, axis=0)                    # (1, h2_dim)
    total_sq = jnp.sum(psq, axis=0)
    mean = total * (1.0 / B)
    var = jnp.maximum(total_sq * (1.0 / B) - mean * mean, 0.0)
    scale = gamma * jax.lax.rsqrt(var + BN_EPS)
    shift = beta - mean * scale

    # ---- pass 2: recompute h1/h2, BatchNorm + ReLU, final Linear ------------
    out_cost = pl.CostEstimate(
        flops=(2 * b_pad * (in_dim * h1_dim + h1_dim * h2_dim + h2_dim * out_pad)
               + 6 * b_pad * h2_dim),
        transcendentals=0,
        bytes_accessed=(2 * (b_pad * in_dim + in_dim * h1_dim + h1_dim * h2_dim
                             + h2_dim * out_pad)
                        + 4 * (h1_dim + 3 * h2_dim + out_pad + b_pad * out_pad)),
    )
    out_p = pl.pallas_call(
        _out_kernel,
        grid=(n_tiles,),
        in_specs=[
            pl.BlockSpec((block_b, in_dim), row),    # x tile (bf16, streamed)
            pl.BlockSpec((in_dim, h1_dim), const),   # W1 (bf16, resident)
            pl.BlockSpec((1, h1_dim), const),        # b1 (f32)
            pl.BlockSpec((h1_dim, h2_dim), const),   # W2 (bf16, resident)
            pl.BlockSpec((1, h2_dim), const),        # b2 (f32)
            pl.BlockSpec((1, h2_dim), const),        # BN scale (f32)
            pl.BlockSpec((1, h2_dim), const),        # BN shift (f32)
            pl.BlockSpec((h2_dim, out_pad), const),  # W3 (bf16, padded, resident)
            pl.BlockSpec((1, out_pad), const),       # b3 (f32, padded)
        ],
        out_specs=pl.BlockSpec((block_b, out_pad), row),
        out_shape=jax.ShapeDtypeStruct((b_pad, out_pad), jnp.float32),
        compiler_params=pltpu.CompilerParams(
            dimension_semantics=("parallel",),
            vmem_limit_bytes=vmem_limit,
        ),
        cost_estimate=out_cost,
    )(x_bf, w1_bf, b1, w2_bf, b2, scale, shift, w3_bf, b3_p)

    return out_p[:B, :out_dim]


# ---------------------------------------------------------------- reference -
def mlp_reference(x, params):
    """Pure-f32 JAX reference with PyTorch train-mode BatchNorm1d semantics."""
    w1, b1, w2, b2, gamma, beta, w3, b3 = params
    h1 = jnp.maximum(x @ w1 + b1, 0.0)
    h2 = h1 @ w2 + b2
    mean = jnp.mean(h2, axis=0, keepdims=True)
    var = jnp.mean((h2 - mean) ** 2, axis=0, keepdims=True)   # biased variance
    h2n = (h2 - mean) / jnp.sqrt(var + BN_EPS) * gamma + beta
    h2n = jnp.maximum(h2n, 0.0)
    return h2n @ w3 + b3


def init_params(key, input_dim, output_dim):
    """Deterministic init; Linear weights stored as [in, out]."""
    k1, k2, k3, k4, k5, k6 = jax.random.split(key, 6)

    def lin(kw, kb, fan_in, fan_out):
        bound = 1.0 / jnp.sqrt(fan_in)
        w = jax.random.uniform(kw, (fan_in, fan_out), jnp.float32, -bound, bound)
        b = jax.random.uniform(kb, (1, fan_out), jnp.float32, -bound, bound)
        return w, b

    w1, b1 = lin(k1, k2, input_dim, 128)
    w2, b2 = lin(k3, k4, 128, 256)
    w3, b3 = lin(k5, k6, 256, output_dim)
    gamma = jnp.ones((1, 256), jnp.float32)   # BatchNorm1d affine init
    beta = jnp.zeros((1, 256), jnp.float32)
    return (w1, b1, w2, b2, gamma, beta, w3, b3)


if __name__ == "__main__":
    key = jax.random.PRNGKey(0)
    kx, kp = jax.random.split(key)

    batch, input_dim, output_dim = 8, 32, 16
    x = jax.random.normal(kx, (batch, input_dim), jnp.float32)
    params = init_params(kp, input_dim, output_dim)

    out = jax.block_until_ready(jax.jit(mlp_forward)(x, params))
    ref = mlp_reference(x, params)

    assert out.shape == (batch, output_dim)
    # bf16 MXU operands (f32 accumulation) => looser tolerance vs the pure-f32
    # reference; BatchNorm normalization itself is computed in f32.
    assert jnp.allclose(out, ref, atol=5e-2, rtol=5e-2), "mismatch vs reference"

    print("KERNEL_OK")
</pallas_src>

<mosaic_0001>
module attributes {stable_mosaic.version = 11 : i64} {
  func.func @_stats_kernel(%arg0: i32, %arg1: memref<16x32xbf16, #tpu.memory_space<vmem>>, %arg2: memref<32x128xbf16, #tpu.memory_space<vmem>>, %arg3: memref<1x128xf32, #tpu.memory_space<vmem>>, %arg4: memref<128x256xbf16, #tpu.memory_space<vmem>>, %arg5: memref<1x256xf32, #tpu.memory_space<vmem>>, %arg6: memref<1x1x256xf32, #tpu.memory_space<vmem>>, %arg7: memref<1x1x256xf32, #tpu.memory_space<vmem>>) attributes {dimension_semantics = [#tpu.dimension_semantics<parallel>], iteration_bounds = array<i64: 1>, scalar_prefetch = 0 : i64, scratch_operands = 0 : i64, tpu.core_type = #tpu.core_type<tc>, window_params = [{transform_indices = @transform_0, window_bounds = array<i64: 16, 32>}, {pipeline_mode = #tpu.pipeline_mode<synchronous>, transform_indices = @transform_1, window_bounds = array<i64: 32, 128>}, {pipeline_mode = #tpu.pipeline_mode<synchronous>, transform_indices = @transform_2, window_bounds = array<i64: 1, 128>}, {pipeline_mode = #tpu.pipeline_mode<synchronous>, transform_indices = @transform_3, window_bounds = array<i64: 128, 256>}, {pipeline_mode = #tpu.pipeline_mode<synchronous>, transform_indices = @transform_4, window_bounds = array<i64: 1, 256>}, {transform_indices = @transform_5, window_bounds = array<i64: 1, 1, 256>}, {transform_indices = @transform_6, window_bounds = array<i64: 1, 1, 256>}]} {
    %c0 = arith.constant 0 : index
    %c0_0 = arith.constant 0 : index
    %0 = vector.load %arg1[%c0, %c0_0] : memref<16x32xbf16, #tpu.memory_space<vmem>>, vector<16x32xbf16>
    %c0_1 = arith.constant 0 : index
    %c0_2 = arith.constant 0 : index
    %1 = vector.load %arg2[%c0_1, %c0_2] : memref<32x128xbf16, #tpu.memory_space<vmem>>, vector<32x128xbf16>
    %cst = arith.constant dense<0.000000e+00> : vector<16x128xf32>
    %2 = tpu.matmul %0, %1, %cst {dimension_numbers = #tpu.dot_dimension_numbers<[1], [0], [0], [1], [0, 0, 1, 1], [], []>} : vector<16x32xbf16>, vector<32x128xbf16>, vector<16x128xf32> -> vector<16x128xf32>
    %c0_3 = arith.constant 0 : index
    %c0_4 = arith.constant 0 : index
    %3 = vector.load %arg3[%c0_3, %c0_4] : memref<1x128xf32, #tpu.memory_space<vmem>>, vector<1x128xf32>
    %4 = vector.broadcast %3 : vector<1x128xf32> to vector<16x128xf32>
    %5 = arith.addf %2, %4 : vector<16x128xf32>
    %cst_5 = arith.constant 0.000000e+00 : f32
    %6 = vector.broadcast %cst_5 : f32 to vector<16x128xf32>
    %7 = arith.maximumf %5, %6 : vector<16x128xf32>
    %8 = arith.truncf %7 : vector<16x128xf32> to vector<16x128xbf16>
    %c0_6 = arith.constant 0 : index
    %c0_7 = arith.constant 0 : index
    %9 = vector.load %arg4[%c0_6, %c0_7] : memref<128x256xbf16, #tpu.memory_space<vmem>>, vector<128x256xbf16>
    %cst_8 = arith.constant dense<0.000000e+00> : vector<16x256xf32>
    %10 = tpu.matmul %8, %9, %cst_8 {dimension_numbers = #tpu.dot_dimension_numbers<[1], [0], [0], [1], [0, 0, 1, 1], [], []>} : vector<16x128xbf16>, vector<128x256xbf16>, vector<16x256xf32> -> vector<16x256xf32>
    %c0_9 = arith.constant 0 : index
    %c0_10 = arith.constant 0 : index
    %11 = vector.load %arg5[%c0_9, %c0_10] : memref<1x256xf32, #tpu.memory_space<vmem>>, vector<1x256xf32>
    %12 = vector.broadcast %11 : vector<1x256xf32> to vector<16x256xf32>
    %13 = arith.addf %10, %12 : vector<16x256xf32>
    %c0_i32 = arith.constant 0 : i32
    %14 = arith.cmpi ne, %arg0, %c0_i32 : i32
    %15 = arith.extui %14 : i1 to i32
    %c0_i32_11 = arith.constant 0 : i32
    %16 = arith.cmpi ne, %15, %c0_i32_11 : i32
    scf.if %16 {
      %cst_14 = arith.constant dense<0.000000e+00> : vector<256xf32>
      %20 = vector.multi_reduction <add>, %13, %cst_14 [0] : vector<16x256xf32> to vector<256xf32>
      %21 = vector.shape_cast %20 : vector<256xf32> to vector<1x256xf32>
      %22 = vector.shape_cast %21 : vector<1x256xf32> to vector<1x1x256xf32>
      %c0_15 = arith.constant 0 : index
      %c0_16 = arith.constant 0 : index
      %c0_17 = arith.constant 0 : index
      %23 = vector.load %arg6[%c0_15, %c0_16, %c0_17] : memref<1x1x256xf32, #tpu.memory_space<vmem>>, vector<1x1x256xf32>
      tpu.vector_store %arg6[%c0_15, %c0_16, %c0_17], %22 {strides = array<i32>} : memref<1x1x256xf32, #tpu.memory_space<vmem>>, vector<1x1x256xf32>,
      %24 = arith.mulf %13, %13 : vector<16x256xf32>
      %cst_18 = arith.constant dense<0.000000e+00> : vector<256xf32>
      %25 = vector.multi_reduction <add>, %24, %cst_18 [0] : vector<16x256xf32> to vector<256xf32>
      %26 = vector.shape_cast %25 : vector<256xf32> to vector<1x256xf32>
      %27 = vector.shape_cast %26 : vector<1x256xf32> to vector<1x1x256xf32>
      %c0_19 = arith.constant 0 : index
      %c0_20 = arith.constant 0 : index
      %c0_21 = arith.constant 0 : index
      %28 = vector.load %arg7[%c0_19, %c0_20, %c0_21] : memref<1x1x256xf32, #tpu.memory_space<vmem>>, vector<1x1x256xf32>
      tpu.vector_store %arg7[%c0_19, %c0_20, %c0_21], %27 {strides = array<i32>} : memref<1x1x256xf32, #tpu.memory_space<vmem>>, vector<1x1x256xf32>,
    } else {
    }
    %c0_i32_12 = arith.constant 0 : i32
    %17 = arith.cmpi eq, %arg0, %c0_i32_12 : i32
    %18 = arith.extui %17 : i1 to i32
    %c0_i32_13 = arith.constant 0 : i32
    %19 = arith.cmpi ne, %18, %c0_i32_13 : i32
    scf.if %19 {
      %c16_i32 = arith.constant 16 : i32
      %20 = arith.muli %arg0, %c16_i32 : i32
      %21 = tpu.iota {dimensions = array<i32: 0>} : vector<16x1xi32>
      %22 = vector.broadcast %20 : i32 to vector<16x1xi32>
      %23 = arith.addi %22, %21 : vector<16x1xi32>
      %c8_i32 = arith.constant 8 : i32
      %24 = vector.broadcast %c8_i32 : i32 to vector<16x1xi32>
      %25 = arith.cmpi slt, %23, %24 : vector<16x1xi32>
      %26 = arith.extui %25 : vector<16x1xi1> to vector<16x1xi32>
      %27 = arith.sitofp %26 : vector<16x1xi32> to vector<16x1xf32>
      %28 = vector.broadcast %27 : vector<16x1xf32> to vector<16x256xf32>
      %29 = arith.mulf %13, %28 : vector<16x256xf32>
      %cst_14 = arith.constant dense<0.000000e+00> : vector<256xf32>
      %30 = vector.multi_reduction <add>, %29, %cst_14 [0] : vector<16x256xf32> to vector<256xf32>
      %31 = vector.shape_cast %30 : vector<256xf32> to vector<1x256xf32>
      %32 = vector.shape_cast %31 : vector<1x256xf32> to vector<1x1x256xf32>
      %c0_15 = arith.constant 0 : index
      %c0_16 = arith.constant 0 : index
      %c0_17 = arith.constant 0 : index
      %33 = vector.load %arg6[%c0_15, %c0_16, %c0_17] : memref<1x1x256xf32, #tpu.memory_space<vmem>>, vector<1x1x256xf32>
      tpu.vector_store %arg6[%c0_15, %c0_16, %c0_17], %32 {strides = array<i32>} : memref<1x1x256xf32, #tpu.memory_space<vmem>>, vector<1x1x256xf32>,
      %34 = arith.mulf %29, %29 : vector<16x256xf32>
      %cst_18 = arith.constant dense<0.000000e+00> : vector<256xf32>
      %35 = vector.multi_reduction <add>, %34, %cst_18 [0] : vector<16x256xf32> to vector<256xf32>
      %36 = vector.shape_cast %35 : vector<256xf32> to vector<1x256xf32>
      %37 = vector.shape_cast %36 : vector<1x256xf32> to vector<1x1x256xf32>
      %c0_19 = arith.constant 0 : index
      %c0_20 = arith.constant 0 : index
      %c0_21 = arith.constant 0 : index
      %38 = vector.load %arg7[%c0_19, %c0_20, %c0_21] : memref<1x1x256xf32, #tpu.memory_space<vmem>>, vector<1x1x256xf32>
      tpu.vector_store %arg7[%c0_19, %c0_20, %c0_21], %37 {strides = array<i32>} : memref<1x1x256xf32, #tpu.memory_space<vmem>>, vector<1x1x256xf32>,
    } else {
    }
    return
  }
  func.func @transform_0(%arg0: i32) -> (i32, i32) {
    %c0_i32 = arith.constant 0 : i32
    %c0_i32_0 = arith.constant 0 : i32
    return %arg0, %c0_i32 : i32, i32
  }
  func.func @transform_1(%arg0: i32) -> (i32, i32) {
    %c0_i32 = arith.constant 0 : i32
    %c0_i32_0 = arith.constant 0 : i32
    %c0_i32_1 = arith.constant 0 : i32
    return %c0_i32, %c0_i32_0 : i32, i32
  }
  func.func @transform_2(%arg0: i32) -> (i32, i32) {
    %c0_i32 = arith.constant 0 : i32
    %c0_i32_0 = arith.constant 0 : i32
    %c0_i32_1 = arith.constant 0 : i32
    return %c0_i32, %c0_i32_0 : i32, i32
  }
  func.func @transform_3(%arg0: i32) -> (i32, i32) {
    %c0_i32 = arith.constant 0 : i32
    %c0_i32_0 = arith.constant 0 : i32
    %c0_i32_1 = arith.constant 0 : i32
    return %c0_i32, %c0_i32_0 : i32, i32
  }
  func.func @transform_4(%arg0: i32) -> (i32, i32) {
    %c0_i32 = arith.constant 0 : i32
    %c0_i32_0 = arith.constant 0 : i32
    %c0_i32_1 = arith.constant 0 : i32
    return %c0_i32, %c0_i32_0 : i32, i32
  }
  func.func @transform_5(%arg0: i32) -> (i32, i32, i32) {
    %c0_i32 = arith.constant 0 : i32
    %c0_i32_0 = arith.constant 0 : i32
    %c0_i32_1 = arith.constant 0 : i32
    return %arg0, %c0_i32, %c0_i32_0 : i32, i32, i32
  }
  func.func @transform_6(%arg0: i32) -> (i32, i32, i32) {
    %c0_i32 = arith.constant 0 : i32
    %c0_i32_0 = arith.constant 0 : i32
    %c0_i32_1 = arith.constant 0 : i32
    return %arg0, %c0_i32, %c0_i32_0 : i32, i32, i32
  }
}

module attributes {stable_mosaic.version = 11 : i64} {
  func.func @_out_kernel(%arg0: i32, %arg1: memref<16x32xbf16, #tpu.memory_space<vmem>>, %arg2: memref<32x128xbf16, #tpu.memory_space<vmem>>, %arg3: memref<1x128xf32, #tpu.memory_space<vmem>>, %arg4: memref<128x256xbf16, #tpu.memory_space<vmem>>, %arg5: memref<1x256xf32, #tpu.memory_space<vmem>>, %arg6: memref<1x256xf32, #tpu.memory_space<vmem>>, %arg7: memref<1x256xf32, #tpu.memory_space<vmem>>, %arg8: memref<256x128xbf16, #tpu.memory_space<vmem>>, %arg9: memref<1x128xf32, #tpu.memory_space<vmem>>, %arg10: memref<16x128xf32, #tpu.memory_space<vmem>>) attributes {dimension_semantics = [#tpu.dimension_semantics<parallel>], iteration_bounds = array<i64: 1>, scalar_prefetch = 0 : i64, scratch_operands = 0 : i64, tpu.core_type = #tpu.core_type<tc>, window_params = [{transform_indices = @transform_0, window_bounds = array<i64: 16, 32>}, {pipeline_mode = #tpu.pipeline_mode<synchronous>, transform_indices = @transform_1, window_bounds = array<i64: 32, 128>}, {pipeline_mode = #tpu.pipeline_mode<synchronous>, transform_indices = @transform_2, window_bounds = array<i64: 1, 128>}, {pipeline_mode = #tpu.pipeline_mode<synchronous>, transform_indices = @transform_3, window_bounds = array<i64: 128, 256>}, {pipeline_mode = #tpu.pipeline_mode<synchronous>, transform_indices = @transform_4, window_bounds = array<i64: 1, 256>}, {pipeline_mode = #tpu.pipeline_mode<synchronous>, transform_indices = @transform_5, window_bounds = array<i64: 1, 256>}, {pipeline_mode = #tpu.pipeline_mode<synchronous>, transform_indices = @transform_6, window_bounds = array<i64: 1, 256>}, {pipeline_mode = #tpu.pipeline_mode<synchronous>, transform_indices = @transform_7, window_bounds = array<i64: 256, 128>}, {pipeline_mode = #tpu.pipeline_mode<synchronous>, transform_indices = @transform_8, window_bounds = array<i64: 1, 128>}, {transform_indices = @transform_9, window_bounds = array<i64: 16, 128>}]} {
    %c0 = arith.constant 0 : index
    %c0_0 = arith.constant 0 : index
    %0 = vector.load %arg1[%c0, %c0_0] : memref<16x32xbf16, #tpu.memory_space<vmem>>, vector<16x32xbf16>
    %c0_1 = arith.constant 0 : index
    %c0_2 = arith.constant 0 : index
    %1 = vector.load %arg2[%c0_1, %c0_2] : memref<32x128xbf16, #tpu.memory_space<vmem>>, vector<32x128xbf16>
    %cst = arith.constant dense<0.000000e+00> : vector<16x128xf32>
    %2 = tpu.matmul %0, %1, %cst {dimension_numbers = #tpu.dot_dimension_numbers<[1], [0], [0], [1], [0, 0, 1, 1], [], []>} : vector<16x32xbf16>, vector<32x128xbf16>, vector<16x128xf32> -> vector<16x128xf32>
    %c0_3 = arith.constant 0 : index
    %c0_4 = arith.constant 0 : index
    %3 = vector.load %arg3[%c0_3, %c0_4] : memref<1x128xf32, #tpu.memory_space<vmem>>, vector<1x128xf32>
    %4 = vector.broadcast %3 : vector<1x128xf32> to vector<16x128xf32>
    %5 = arith.addf %2, %4 : vector<16x128xf32>
    %cst_5 = arith.constant 0.000000e+00 : f32
    %6 = vector.broadcast %cst_5 : f32 to vector<16x128xf32>
    %7 = arith.maximumf %5, %6 : vector<16x128xf32>
    %8 = arith.truncf %7 : vector<16x128xf32> to vector<16x128xbf16>
    %c0_6 = arith.constant 0 : index
    %c0_7 = arith.constant 0 : index
    %9 = vector.load %arg4[%c0_6, %c0_7] : memref<128x256xbf16, #tpu.memory_space<vmem>>, vector<128x256xbf16>
    %cst_8 = arith.constant dense<0.000000e+00> : vector<16x256xf32>
    %10 = tpu.matmul %8, %9, %cst_8 {dimension_numbers = #tpu.dot_dimension_numbers<[1], [0], [0], [1], [0, 0, 1, 1], [], []>} : vector<16x128xbf16>, vector<128x256xbf16>, vector<16x256xf32> -> vector<16x256xf32>
    %c0_9 = arith.constant 0 : index
    %c0_10 = arith.constant 0 : index
    %11 = vector.load %arg5[%c0_9, %c0_10] : memref<1x256xf32, #tpu.memory_space<vmem>>, vector<1x256xf32>
    %12 = vector.broadcast %11 : vector<1x256xf32> to vector<16x256xf32>
    %13 = arith.addf %10, %12 : vector<16x256xf32>
    %c0_11 = arith.constant 0 : index
    %c0_12 = arith.constant 0 : index
    %14 = vector.load %arg6[%c0_11, %c0_12] : memref<1x256xf32, #tpu.memory_space<vmem>>, vector<1x256xf32>
    %15 = vector.broadcast %14 : vector<1x256xf32> to vector<16x256xf32>
    %16 = arith.mulf %13, %15 : vector<16x256xf32>
    %c0_13 = arith.constant 0 : index
    %c0_14 = arith.constant 0 : index
    %17 = vector.load %arg7[%c0_13, %c0_14] : memref<1x256xf32, #tpu.memory_space<vmem>>, vector<1x256xf32>
    %18 = vector.broadcast %17 : vector<1x256xf32> to vector<16x256xf32>
    %19 = arith.addf %16, %18 : vector<16x256xf32>
    %cst_15 = arith.constant 0.000000e+00 : f32
    %20 = vector.broadcast %cst_15 : f32 to vector<16x256xf32>
    %21 = arith.maximumf %19, %20 : vector<16x256xf32>
    %22 = arith.truncf %21 : vector<16x256xf32> to vector<16x256xbf16>
    %c0_16 = arith.constant 0 : index
    %c0_17 = arith.constant 0 : index
    %23 = vector.load %arg8[%c0_16, %c0_17] : memref<256x128xbf16, #tpu.memory_space<vmem>>, vector<256x128xbf16>
    %cst_18 = arith.constant dense<0.000000e+00> : vector<16x128xf32>
    %24 = tpu.matmul %22, %23, %cst_18 {dimension_numbers = #tpu.dot_dimension_numbers<[1], [0], [0], [1], [0, 0, 1, 1], [], []>} : vector<16x256xbf16>, vector<256x128xbf16>, vector<16x128xf32> -> vector<16x128xf32>
    %c0_19 = arith.constant 0 : index
    %c0_20 = arith.constant 0 : index
    %25 = vector.load %arg9[%c0_19, %c0_20] : memref<1x128xf32, #tpu.memory_space<vmem>>, vector<1x128xf32>
    %26 = vector.broadcast %25 : vector<1x128xf32> to vector<16x128xf32>
    %27 = arith.addf %24, %26 : vector<16x128xf32>
    %c0_21 = arith.constant 0 : index
    %c0_22 = arith.constant 0 : index
    %28 = vector.load %arg10[%c0_21, %c0_22] : memref<16x128xf32, #tpu.memory_space<vmem>>, vector<16x128xf32>
    tpu.vector_store %arg10[%c0_21, %c0_22], %27 {strides = array<i32>} : memref<16x128xf32, #tpu.memory_space<vmem>>, vector<16x128xf32>,
    return
  }
  func.func @transform_0(%arg0: i32) -> (i32, i32) {
    %c0_i32 = arith.constant 0 : i32
    %c0_i32_0 = arith.constant 0 : i32
    return %arg0, %c0_i32 : i32, i32
  }
  func.func @transform_1(%arg0: i32) -> (i32, i32) {
    %c0_i32 = arith.constant 0 : i32
    %c0_i32_0 = arith.constant 0 : i32
    %c0_i32_1 = arith.constant 0 : i32
    return %c0_i32, %c0_i32_0 : i32, i32
  }
  func.func @transform_2(%arg0: i32) -> (i32, i32) {
    %c0_i32 = arith.constant 0 : i32
    %c0_i32_0 = arith.constant 0 : i32
    %c0_i32_1 = arith.constant 0 : i32
    return %c0_i32, %c0_i32_0 : i32, i32
  }
  func.func @transform_3(%arg0: i32) -> (i32, i32) {
    %c0_i32 = arith.constant 0 : i32
    %c0_i32_0 = arith.constant 0 : i32
    %c0_i32_1 = arith.constant 0 : i32
    return %c0_i32, %c0_i32_0 : i32, i32
  }
  func.func @transform_4(%arg0: i32) -> (i32, i32) {
    %c0_i32 = arith.constant 0 : i32
    %c0_i32_0 = arith.constant 0 : i32
    %c0_i32_1 = arith.constant 0 : i32
    return %c0_i32, %c0_i32_0 : i32, i32
  }
  func.func @transform_5(%arg0: i32) -> (i32, i32) {
    %c0_i32 = arith.constant 0 : i32
    %c0_i32_0 = arith.constant 0 : i32
    %c0_i32_1 = arith.constant 0 : i32
    return %c0_i32, %c0_i32_0 : i32, i32
  }
  func.func @transform_6(%arg0: i32) -> (i32, i32) {
    %c0_i32 = arith.constant 0 : i32
    %c0_i32_0 = arith.constant 0 : i32
    %c0_i32_1 = arith.constant 0 : i32
    return %c0_i32, %c0_i32_0 : i32, i32
  }
  func.func @transform_7(%arg0: i32) -> (i32, i32) {
    %c0_i32 = arith.constant 0 : i32
    %c0_i32_0 = arith.constant 0 : i32
    %c0_i32_1 = arith.constant 0 : i32
    return %c0_i32, %c0_i32_0 : i32, i32
  }
  func.func @transform_8(%arg0: i32) -> (i32, i32) {
    %c0_i32 = arith.constant 0 : i32
    %c0_i32_0 = arith.constant 0 : i32
    %c0_i32_1 = arith.constant 0 : i32
    return %c0_i32, %c0_i32_0 : i32, i32
  }
  func.func @transform_9(%arg0: i32) -> (i32, i32) {
    %c0_i32 = arith.constant 0 : i32
    %c0_i32_0 = arith.constant 0 : i32
    return %arg0, %c0_i32 : i32, i32
  }
}

</mosaic_0001>

<bundles_post_ra>
// kernel: mlp_forward.2
= control target key start
LH: loop header
LB: loop body
LE: loop exit
PB: predicated region body
PF: predicated region fallthrough
CT: control target
= control target key end

     0   :  { %vm50_vm0 = vcmask 261120   ;;  %vm292_vm1 = vcmask 1040384   ;;  %s581_s1 = inlined_call_operand.vmem [shape: bf16[32,128], index: 1, kind: input, shape index: {}]   ;;  %s582_s3 = inlined_call_operand.vmem [shape: bf16[128,256], index: 3, kind: input, shape index: {}]   ;;  %s583_s0 = inlined_call_operand.vmem [shape: bf16[16,32], index: 0, kind: input, shape index: {}]   ;;  %s584_s2 = inlined_call_operand.vmem [shape: f32[1,128], index: 2, kind: input, shape index: {}]   ;;  %s585_s4 = inlined_call_operand.vmem [shape: f32[1,256], index: 4, kind: input, shape index: {}]   ;;  %s586_s5 = inlined_call_operand.vmem [shape: f32[1,1,256], index: 5, kind: output, shape index: {0}]   ;;  %s587_s6 = inlined_call_operand.vmem [shape: f32[1,1,256], index: 6, kind: output, shape index: {1}]  }
   0x1   :  { %v411_v0 = vld [vmem:[%s581_s1 + $0x8] sm:$0xff]  ;;  %v410_v1 = vld [vmem:[%s581_s1] sm:$0xff]  ;;  %v403_v2 = vld [vmem:[%s582_s3 + $0x70] sm:$0xf] }
   0x2   :  { %v427_v3 = vld [vmem:[%s582_s3 + $0x74] sm:$0xf0]  ;;  %v426_v4 = vld [vmem:[%s582_s3 + $0x74] sm:$0xf]  ;;  %60 = vmatpush.bf16.msra.mxu0 %v411_v0  ;;  %v405_v6 = vld [vmem:[%s582_s3 + $0x78] sm:$0xf0] }
   0x3   :  { %v404_v5 = vor.u32 %v427_v3, %v403_v2  ;;  %v395_v7 = vld [vmem:[%s582_s3 + $0x60] sm:$0xf]  ;;  %v425_v8 = vld [vmem:[%s582_s3 + $0x64] sm:$0xf0]  ;;  %v408_v9 = vor.u32 %v426_v4, %v405_v6  ;;  %v424_v10 = vld [vmem:[%s582_s3 + $0x64] sm:$0xf] }
   0x4   :  { %v397_v11 = vld [vmem:[%s582_s3 + $0x68] sm:$0xf0]  ;;  %v396_v12 = vor.u32 %v425_v8, %v395_v7  ;;  %v409_v13 = vld [vmem:[%s583_s0] sm:$0xff]  ;;  %v387_v15 = vld [vmem:[%s582_s3 + $0x50] sm:$0xf] }
   0x5   :  { %173 = vmatpush.bf16.msra.mxu1 %v404_v5  ;;  %187 = vmatpush.bf16.msra.mxu2 %v408_v9  ;;  %v400_v14 = vor.u32 %v424_v10, %v397_v11  ;;  %v423_v16 = vld [vmem:[%s582_s3 + $0x54] sm:$0xf0]  ;;  %v422_v17 = vld [vmem:[%s582_s3 + $0x54] sm:$0xf]  ;;  %v389_v18 = vld [vmem:[%s582_s3 + $0x58] sm:$0xf0] }
   0x6   :  { %61 = vmatpush.bf16.msra.mxu0 %v410_v1  ;;  %v388_v19 = vor.u32 %v423_v16, %v387_v15  ;;  %v392_v20 = vor.u32 %v422_v17, %v389_v18  ;;  %v379_v21 = vld [vmem:[%s582_s3 + $0x40] sm:$0xf]  ;;  %v421_v22 = vld [vmem:[%s582_s3 + $0x44] sm:$0xf0]  ;;  %v420_v23 = vld [vmem:[%s582_s3 + $0x44] sm:$0xf] }
   0x7   :  { %v381_v24 = vld [vmem:[%s582_s3 + $0x48] sm:$0xf0]  ;;  %v380_v25 = vor.u32 %v421_v22, %v379_v21  ;;  %v371_v27 = vld [vmem:[%s582_s3 + $0x30] sm:$0xf]  ;;  %v419_v28 = vld [vmem:[%s582_s3 + $0x34] sm:$0xf0] }
   0x8   :  { %v384_v26 = vor.u32 %v420_v23, %v381_v24  ;;  %v418_v29 = vld [vmem:[%s582_s3 + $0x34] sm:$0xf]  ;;  %v372_v30 = vor.u32 %v419_v28, %v371_v27  ;;  %v373_v31 = vld [vmem:[%s582_s3 + $0x38] sm:$0xf0]  ;;  %v363_v33 = vld [vmem:[%s582_s3 + $0x20] sm:$0xf] }
   0x9   :  { %174 = vmatpush.bf16.msra.mxu1 %v396_v12  ;;  %344 = vmatmul.msk.bf16.vlgmr.msra.gmra.mxu0 %vm50_vm0, %v409_v13  ;;  %v376_v32 = vor.u32 %v418_v29, %v373_v31  ;;  %v417_v34 = vld [vmem:[%s582_s3 + $0x24] sm:$0xf0]  ;;  %v416_v35 = vld [vmem:[%s582_s3 + $0x24] sm:$0xf]  ;;  %v365_v37 = vld [vmem:[%s582_s3 + $0x28] sm:$0xf0] }
   0xa   :  { %188 = vmatpush.bf16.msra.mxu2 %v400_v14  ;;  %v364_v36 = vor.u32 %v417_v34, %v363_v33  ;;  %v368_v38 = vor.u32 %v416_v35, %v365_v37  ;;  %v355_v39 = vld [vmem:[%s582_s3 + $0x10] sm:$0xf]  ;;  %v415_v40 = vld [vmem:[%s582_s3 + $0x14] sm:$0xf0]  ;;  %v414_v41 = vld [vmem:[%s582_s3 + $0x14] sm:$0xf]  ;;  %v295_v33 = vlaneseq }
   0xb   :  { %v356_v42 = vor.u32 %v415_v40, %v355_v39  ;;  %v357_v43 = vld [vmem:[%s582_s3 + $0x18] sm:$0xf0]  ;;  %v347_v45 = vld [vmem:[%s582_s3] sm:$0xf]  ;;  %v413_v46 = vld [vmem:[%s582_s3 + $0x4] sm:$0xf0] }
   0xc   :  { %v360_v44 = vor.u32 %v414_v41, %v357_v43  ;;  %v412_v47 = vld [vmem:[%s582_s3 + $0x4] sm:$0xf]  ;;  %v348_v48 = vor.u32 %v413_v46, %v347_v45  ;;  %v349_v49 = vld [vmem:[%s582_s3 + $0x8] sm:$0xf0]  ;;  %v428_v52 = vld [vmem:[%s584_s2] ss:$0 sm:$0xff] }
   0xd   :  { %175 = vmatpush.bf16.msra.mxu1 %v388_v19  ;;  %v352_v50 = vor.u32 %v412_v47, %v349_v49  ;;  %v87_v60 = vld [vmem:[%s585_s4] sm:$0x3]  ;;  %vm297_vm2 = vcmp.lt.s32.totalorder %v295_v33, 256 }
   0xe   :  { %189 = vmatpush.bf16.msra.mxu2 %v392_v20  ;;  %v89_v61 = vperm.slane %v87_v60, 0  ;;  %v90_v2 = vperm.slane %v87_v60, 1 }
  0x11   :  { %176 = vmatpush.bf16.msra.mxu1 %v380_v25 }
  0x12   :  { %190 = vmatpush.bf16.msra.mxu2 %v384_v26 }
  0x15   :  { %177 = vmatpush.bf16.msra.mxu1 %v372_v30 }
  0x16   :  { %191 = vmatpush.bf16.msra.mxu2 %v376_v32 }
  0x19   :  { %178 = vmatpush.bf16.msra.mxu1 %v364_v36 }
  0x1a   :  { %192 = vmatpush.bf16.msra.mxu2 %v368_v38 }
  0x1d   :  { %179 = vmatpush.bf16.msra.mxu1 %v356_v42 }
  0x1e   :  { %193 = vmatpush.bf16.msra.mxu2 %v360_v44 }
  0x21   :  { %180 = vmatpush.bf16.msra.mxu1 %v348_v48 }
  0x22   :  { %194 = vmatpush.bf16.msra.mxu2 %v352_v50 }
  0x86   :  { %v63_v51 = vpop.f32.mrf.mxu0 }
  0x87   :  { %v64_v53 = vadd.f32 %v428_v52, %v63_v51 }
  0x89   :  { %v68_v56 = vmax.f32 %v64_v53, 0.0 }
  0x8e   :  { %v65_v54 = vpop.f32.mrf.mxu0 }
  0x8f   :  { %v66_v55 = vadd.f32 %v428_v52, %v65_v54 }
  0x91   :  { %v69_v57 = vmax.f32 %v66_v55, 0.0 }
  0x93   :  { %v70_v58 = vpack.c.bf16 %v69_v57, %v68_v56 }
  0x95   :  { %181 = vmatmul.bf16.vlgmr.msra.gmra.mxu1 %v70_v58  ;;  %195 = vmatmul.bf16.vlgmr.msra.gmra.mxu2 %v70_v58 }
 0x112   :  { %v182_v59 = vpop.f32.mrf.mxu1 }
 0x113   :  { %v183_v0 = vadd.f32 %v182_v59, %v89_v61 }
 0x115   :  { %v300_v4 = vmul.f32 %v183_v0, %v183_v0 }
 0x118   :  { %v196_v62 = vpop.f32.mrf.mxu2 }
 0x119   :  { %v197_v8 = vadd.f32 %v196_v62, %v90_v2 }
 0x11a   :  { %v184_v63 = vpop.f32.mrf.mxu1 }
 0x11b   :  { %v185_v1 = vadd.f32 %v184_v63, %v89_v61  ;;  %v301_v15 = vmul.f32 %v197_v8, %v197_v8 }
 0x11d   :  { %v273_v3 = vmul.f32 0.0, %v185_v1 }
 0x11f   :  { %v275_v5 = vadd.f32 %v273_v3, %v183_v0  ;;  %v302_v6 = vmul.f32 %v273_v3, %v273_v3 }
 0x120   :  { %v198_v7 = vpop.f32.mrf.mxu2 }
 0x121   :  { %v276_v9 = vrot.slane %v275_v5, 4  ;;  %v304_v10 = vadd.f32 %v302_v6, %v300_v4  ;;  %v199_v11 = vadd.f32 %v198_v7, %v90_v2 }
 0x123   :  { %v277_v12 = vadd.f32 %v276_v9, %v275_v5  ;;  %v305_v13 = vrot.slane %v304_v10, 4  ;;  %v274_v14 = vmul.f32 0.0, %v199_v11 }
 0x125   :  { %v306_v16 = vadd.f32 %v305_v13, %v304_v10  ;;  %v282_v17 = vadd.f32 %v274_v14, %v197_v8  ;;  %v303_v18 = vmul.f32 %v274_v14, %v274_v14  ;;  %v278_v19 = vrot.slane %v277_v12, 2 }
 0x127   :  { %v283_v20 = vrot.slane %v282_v17, 4  ;;  %v311_v21 = vadd.f32 %v303_v18, %v301_v15  ;;  %v307_v22 = vrot.slane %v306_v16, 2  ;;  %v279_v25 = vadd.f32 %v278_v19, %v277_v12 }
 0x129   :  { %v284_v23 = vadd.f32 %v283_v20, %v282_v17  ;;  %v312_v24 = vrot.slane %v311_v21, 4  ;;  %v308_v28 = vadd.f32 %v307_v22, %v306_v16  ;;  %v280_v31 = vrot.slane %v279_v25, 1 }
 0x12b   :  { %v285_v26 = vrot.slane %v284_v23, 2  ;;  %v313_v27 = vadd.f32 %v312_v24, %v311_v21  ;;  %v309_v35 = vrot.slane %v308_v28, 1  ;;  %v281_v38 = vadd.f32 %v280_v31, %v279_v25 }
 0x12d   :  { %v286_v29 = vadd.f32 %v285_v26, %v284_v23  ;;  %v314_v30 = vrot.slane %v313_v27, 2  ;;  %v310_v41 = vadd.f32 %v309_v35, %v308_v28 }
 0x12f   :  { %v287_v32 = vrot.slane %v286_v29, 1  ;;  %v315_v34 = vadd.f32 %v314_v30, %v313_v27 }
 0x131   :  { %v288_v36 = vadd.f32 %v287_v32, %v286_v29  ;;  %v316_v37 = vrot.slane %v315_v34, 1 }
 0x133   :  { %v291_v39 = vrot.slane %v288_v36, 7  ;;  %v317_v40 = vadd.f32 %v316_v37, %v315_v34 }
 0x135   :  { %v293_v42 = vsel %vm292_vm1, %v281_v38, %v291_v39  ;;  %v320_v43 = vrot.slane %v317_v40, 7 }
 0x136   :  { %299 = vst.msk [vmem:[%s586_s5] sm:$0x3] %vm297_vm2, %v293_v42 }
 0x137   :  { %v321_v44 = vsel %vm292_vm1, %v310_v41, %v320_v43 }
 0x138   :  { %323 = vst.msk [vmem:[%s587_s6] sm:$0x3] %vm297_vm2, %v321_v44 }

// kernel: mlp_forward.3
= control target key start
LH: loop header
LB: loop body
LE: loop exit
PB: predicated region body
PF: predicated region fallthrough
CT: control target
= control target key end

     0   :  { %vm60_vm0 = vcmask 261120   ;;  %s805_s1 = inlined_call_operand.vmem [shape: bf16[32,128], index: 1, kind: input, shape index: {}]   ;;  %s806_s3 = inlined_call_operand.vmem [shape: bf16[128,256], index: 3, kind: input, shape index: {}]   ;;  %s807_s0 = inlined_call_operand.vmem [shape: bf16[16,32], index: 0, kind: input, shape index: {}]   ;;  %s808_s2 = inlined_call_operand.vmem [shape: f32[1,128], index: 2, kind: input, shape index: {}]   ;;  %s809_s7 = inlined_call_operand.vmem [shape: bf16[256,128], index: 7, kind: input, shape index: {}]   ;;  %s810_s8 = inlined_call_operand.vmem [shape: f32[1,128], index: 8, kind: input, shape index: {}]   ;;  %s811_s4 = inlined_call_operand.vmem [shape: f32[1,256], index: 4, kind: input, shape index: {}]   ;;  %s812_s5 = inlined_call_operand.vmem [shape: f32[1,256], index: 5, kind: input, shape index: {}]   ;;  %s813_s6 = inlined_call_operand.vmem [shape: f32[1,256], index: 6, kind: input, shape index: {}]   ;;  %s814_s9 = inlined_call_operand.vmem [shape: f32[16,128], index: 9, kind: output, shape index: {}]  }
   0x1   :  { %v546_v0 = vld [vmem:[%s805_s1 + $0x8] sm:$0xff]  ;;  %v545_v1 = vld [vmem:[%s805_s1] sm:$0xff]  ;;  %v474_v2 = vld [vmem:[%s806_s3 + $0x70] sm:$0xf] }
   0x2   :  { %v562_v3 = vld [vmem:[%s806_s3 + $0x74] sm:$0xf0]  ;;  %v561_v4 = vld [vmem:[%s806_s3 + $0x74] sm:$0xf]  ;;  %70 = vmatpush.bf16.msra.mxu0 %v546_v0  ;;  %v476_v6 = vld [vmem:[%s806_s3 + $0x78] sm:$0xf0] }
   0x3   :  { %v475_v5 = vor.u32 %v562_v3, %v474_v2  ;;  %v466_v7 = vld [vmem:[%s806_s3 + $0x60] sm:$0xf]  ;;  %v560_v8 = vld [vmem:[%s806_s3 + $0x64] sm:$0xf0]  ;;  %v479_v9 = vor.u32 %v561_v4, %v476_v6  ;;  %v559_v10 = vld [vmem:[%s806_s3 + $0x64] sm:$0xf] }
   0x4   :  { %v468_v11 = vld [vmem:[%s806_s3 + $0x68] sm:$0xf0]  ;;  %v467_v12 = vor.u32 %v560_v8, %v466_v7  ;;  %v544_v13 = vld [vmem:[%s807_s0] sm:$0xff]  ;;  %v458_v15 = vld [vmem:[%s806_s3 + $0x50] sm:$0xf] }
   0x5   :  { %183 = vmatpush.bf16.msra.mxu1 %v475_v5  ;;  %197 = vmatpush.bf16.msra.mxu2 %v479_v9  ;;  %v471_v14 = vor.u32 %v559_v10, %v468_v11  ;;  %v558_v16 = vld [vmem:[%s806_s3 + $0x54] sm:$0xf0]  ;;  %v557_v17 = vld [vmem:[%s806_s3 + $0x54] sm:$0xf]  ;;  %v460_v18 = vld [vmem:[%s806_s3 + $0x58] sm:$0xf0] }
   0x6   :  { %71 = vmatpush.bf16.msra.mxu0 %v545_v1  ;;  %v459_v19 = vor.u32 %v558_v16, %v458_v15  ;;  %v463_v20 = vor.u32 %v557_v17, %v460_v18  ;;  %v450_v21 = vld [vmem:[%s806_s3 + $0x40] sm:$0xf]  ;;  %v556_v22 = vld [vmem:[%s806_s3 + $0x44] sm:$0xf0]  ;;  %v555_v23 = vld [vmem:[%s806_s3 + $0x44] sm:$0xf] }
   0x7   :  { %v452_v24 = vld [vmem:[%s806_s3 + $0x48] sm:$0xf0]  ;;  %v451_v25 = vor.u32 %v556_v22, %v450_v21  ;;  %v442_v27 = vld [vmem:[%s806_s3 + $0x30] sm:$0xf]  ;;  %v554_v28 = vld [vmem:[%s806_s3 + $0x34] sm:$0xf0] }
   0x8   :  { %v455_v26 = vor.u32 %v555_v23, %v452_v24  ;;  %v553_v29 = vld [vmem:[%s806_s3 + $0x34] sm:$0xf]  ;;  %v443_v30 = vor.u32 %v554_v28, %v442_v27  ;;  %v444_v31 = vld [vmem:[%s806_s3 + $0x38] sm:$0xf0]  ;;  %v434_v33 = vld [vmem:[%s806_s3 + $0x20] sm:$0xf] }
   0x9   :  { %184 = vmatpush.bf16.msra.mxu1 %v467_v12  ;;  %415 = vmatmul.msk.bf16.vlgmr.msra.gmra.mxu0 %vm60_vm0, %v544_v13  ;;  %v447_v32 = vor.u32 %v553_v29, %v444_v31  ;;  %v552_v34 = vld [vmem:[%s806_s3 + $0x24] sm:$0xf0]  ;;  %v551_v35 = vld [vmem:[%s806_s3 + $0x24] sm:$0xf]  ;;  %v436_v37 = vld [vmem:[%s806_s3 + $0x28] sm:$0xf0] }
   0xa   :  { %198 = vmatpush.bf16.msra.mxu2 %v471_v14  ;;  %v435_v36 = vor.u32 %v552_v34, %v434_v33  ;;  %v439_v38 = vor.u32 %v551_v35, %v436_v37  ;;  %v426_v39 = vld [vmem:[%s806_s3 + $0x10] sm:$0xf]  ;;  %v550_v40 = vld [vmem:[%s806_s3 + $0x14] sm:$0xf0]  ;;  %v549_v41 = vld [vmem:[%s806_s3 + $0x14] sm:$0xf] }
   0xb   :  { %v427_v42 = vor.u32 %v550_v40, %v426_v39  ;;  %v428_v43 = vld [vmem:[%s806_s3 + $0x18] sm:$0xf0]  ;;  %v418_v45 = vld [vmem:[%s806_s3] sm:$0xf]  ;;  %v548_v46 = vld [vmem:[%s806_s3 + $0x4] sm:$0xf0] }
   0xc   :  { %v431_v44 = vor.u32 %v549_v41, %v428_v43  ;;  %v547_v47 = vld [vmem:[%s806_s3 + $0x4] sm:$0xf]  ;;  %v419_v48 = vor.u32 %v548_v46, %v418_v45  ;;  %v420_v49 = vld [vmem:[%s806_s3 + $0x8] sm:$0xf0]  ;;  %v570_v51 = vld [vmem:[%s809_s7 + $0x38] sm:$0xff] }
   0xd   :  { %185 = vmatpush.bf16.msra.mxu1 %v459_v19  ;;  %v423_v50 = vor.u32 %v547_v47, %v420_v49  ;;  %v578_v52 = vld [vmem:[%s809_s7 + $0x78] sm:$0xff]  ;;  %369 = vmatpush.bf16.msra.mxu3 %v570_v51  ;;  %v569_v53 = vld [vmem:[%s809_s7 + $0x30] sm:$0xff]  ;;  %v568_v55 = vld [vmem:[%s809_s7 + $0x28] sm:$0xff] }
   0xe   :  { %199 = vmatpush.bf16.msra.mxu2 %v463_v20  ;;  %383 = vmatpush.bf16.msrb.mxu0 %v578_v52  ;;  %v577_v54 = vld [vmem:[%s809_s7 + $0x70] sm:$0xff]  ;;  %v579_v57 = vld [vmem:[%s808_s2] ss:$0 sm:$0xff]  ;;  %v576_v1 = vld [vmem:[%s809_s7 + $0x68] sm:$0xff] }
   0xf   :  { %v567_v0 = vld [vmem:[%s809_s7 + $0x20] sm:$0xff]  ;;  %v566_v2 = vld [vmem:[%s809_s7 + $0x18] sm:$0xff]  ;;  %v565_v4 = vld [vmem:[%s809_s7 + $0x10] sm:$0xff] }
  0x10   :  { %v575_v3 = vld [vmem:[%s809_s7 + $0x60] sm:$0xff]  ;;  %v574_v5 = vld [vmem:[%s809_s7 + $0x58] sm:$0xff]  ;;  %v564_v6 = vld [vmem:[%s809_s7 + $0x8] sm:$0xff] }
  0x11   :  { %186 = vmatpush.bf16.msra.mxu1 %v451_v25  ;;  %370 = vmatpush.bf16.msra.mxu3 %v569_v53  ;;  %v573_v7 = vld [vmem:[%s809_s7 + $0x50] sm:$0xff]  ;;  %v563_v8 = vld [vmem:[%s809_s7] sm:$0xff]  ;;  %v572_v9 = vld [vmem:[%s809_s7 + $0x48] sm:$0xff] }
  0x12   :  { %200 = vmatpush.bf16.msra.mxu2 %v455_v26  ;;  %384 = vmatpush.bf16.msrb.mxu0 %v577_v54  ;;  %v571_v10 = vld [vmem:[%s809_s7 + $0x40] sm:$0xff] }
  0x13   :  { %v97_v11 = vld [vmem:[%s811_s4] sm:$0x3] }
  0x14   :  { %v99_v12 = vperm.slane %v97_v11, 0  ;;  %v211_v14 = vld [vmem:[%s812_s5] sm:$0x3]  ;;  %v100_v18 = vperm.slane %v97_v11, 1 }
  0x15   :  { %187 = vmatpush.bf16.msra.mxu1 %v443_v30  ;;  %371 = vmatpush.bf16.msra.mxu3 %v568_v55  ;;  %v213_v16 = vperm.slane %v211_v14, 0  ;;  %v221_v17 = vld [vmem:[%s813_s6] sm:$0x3]  ;;  %v214_v24 = vperm.slane %v211_v14, 1 }
  0x16   :  { %201 = vmatpush.bf16.msra.mxu2 %v447_v32  ;;  %385 = vmatpush.bf16.msrb.mxu0 %v576_v1  ;;  %v223_v21 = vperm.slane %v221_v17, 0  ;;  %v224_v29 = vperm.slane %v221_v17, 1 }
  0x19   :  { %188 = vmatpush.bf16.msra.mxu1 %v435_v36  ;;  %372 = vmatpush.bf16.msra.mxu3 %v567_v0 }
  0x1a   :  { %202 = vmatpush.bf16.msra.mxu2 %v439_v38  ;;  %386 = vmatpush.bf16.msrb.mxu0 %v575_v3 }
  0x1d   :  { %189 = vmatpush.bf16.msra.mxu1 %v427_v42  ;;  %373 = vmatpush.bf16.msra.mxu3 %v566_v2  ;;  %v580_v42 = vld [vmem:[%s810_s8] ss:$0 sm:$0xff] }
  0x1e   :  { %203 = vmatpush.bf16.msra.mxu2 %v431_v44  ;;  %387 = vmatpush.bf16.msrb.mxu0 %v574_v5 }
  0x21   :  { %190 = vmatpush.bf16.msra.mxu1 %v419_v48  ;;  %374 = vmatpush.bf16.msra.mxu3 %v565_v4 }
  0x22   :  { %204 = vmatpush.bf16.msra.mxu2 %v423_v50  ;;  %388 = vmatpush.bf16.msrb.mxu0 %v573_v7 }
  0x25   :  { %375 = vmatpush.bf16.msra.mxu3 %v564_v6 }
  0x26   :  { %389 = vmatpush.bf16.msrb.mxu0 %v572_v9 }
  0x29   :  { %376 = vmatpush.bf16.msra.mxu3 %v563_v8 }
  0x2a   :  { %390 = vmatpush.bf16.msrb.mxu0 %v571_v10 }
  0x86   :  { %v73_v56 = vpop.f32.mrf.mxu0 }
  0x87   :  { %v74_v58 = vadd.f32 %v579_v57, %v73_v56 }
  0x89   :  { %v78_v61 = vmax.f32 %v74_v58, 0.0 }
  0x8e   :  { %v75_v59 = vpop.f32.mrf.mxu0 }
  0x8f   :  { %v76_v60 = vadd.f32 %v579_v57, %v75_v59 }
  0x91   :  { %v79_v62 = vmax.f32 %v76_v60, 0.0 }
  0x93   :  { %v80_v63 = vpack.c.bf16 %v79_v62, %v78_v61 }
  0x95   :  { %191 = vmatmul.bf16.vlgmr.msra.gmra.mxu1 %v80_v63  ;;  %205 = vmatmul.bf16.vlgmr.msra.gmra.mxu2 %v80_v63 }
 0x112   :  { %v192_v13 = vpop.f32.mrf.mxu1 }
 0x113   :  { %v193_v15 = vadd.f32 %v192_v13, %v99_v12 }
 0x115   :  { %v217_v20 = vmul.f32 %v213_v16, %v193_v15 }
 0x117   :  { %v227_v27 = vadd.f32 %v223_v21, %v217_v20 }
 0x118   :  { %v206_v19 = vpop.f32.mrf.mxu2 }
 0x119   :  { %v207_v23 = vadd.f32 %v206_v19, %v100_v18  ;;  %v231_v33 = vmax.f32 %v227_v27, 0.0 }
 0x11a   :  { %v194_v22 = vpop.f32.mrf.mxu1 }
 0x11b   :  { %v195_v25 = vadd.f32 %v194_v22, %v99_v12  ;;  %v218_v28 = vmul.f32 %v214_v24, %v207_v23 }
 0x11d   :  { %v219_v26 = vmul.f32 %v213_v16, %v195_v25  ;;  %v228_v35 = vadd.f32 %v224_v29, %v218_v28 }
 0x11f   :  { %v229_v30 = vadd.f32 %v223_v21, %v219_v26  ;;  %v232_v39 = vmax.f32 %v228_v35, 0.0 }
 0x120   :  { %v208_v31 = vpop.f32.mrf.mxu2 }
 0x121   :  { %v209_v32 = vadd.f32 %v208_v31, %v100_v18  ;;  %v233_v34 = vmax.f32 %v229_v30, 0.0 }
 0x123   :  { %v220_v36 = vmul.f32 %v214_v24, %v209_v32  ;;  %v235_v37 = vpack.c.bf16 %v233_v34, %v231_v33 }
 0x125   :  { %v230_v38 = vadd.f32 %v224_v29, %v220_v36  ;;  %377 = vmatmul.bf16.vlgmr.msra.gmra.mxu3 %v235_v37 }
 0x127   :  { %v234_v40 = vmax.f32 %v230_v38, 0.0 }
 0x129   :  { %v236_v41 = vpack.c.bf16 %v234_v40, %v232_v39 }
 0x12b   :  { %391 = vmatmul.bf16.vlgmr.msrb.gmra.mxu0 %v236_v41 }
 0x1a8   :  { %v378_v43 = vpop.f32.mrf.mxu3  ;;  %v392_v44 = vpop.f32.mrf.mxu0 }
 0x1a9   :  { %v379_v45 = vadd.f32 %v580_v42, %v378_v43 }
 0x1ab   :  { %v393_v46 = vadd.f32 %v392_v44, %v379_v45 }
 0x1ad   :  { %397 = vst [vmem:[%s814_s9] sm:$0xff] %v393_v46 }
 0x1b0   :  { %v380_v47 = vpop.f32.mrf.mxu3  ;;  %v394_v49 = vpop.f32.mrf.mxu0 }
 0x1b1   :  { %v381_v48 = vadd.f32 %v580_v42, %v380_v47 }
 0x1b3   :  { %v395_v50 = vadd.f32 %v394_v49, %v381_v48 }
 0x1b5   :  { %398 = vst [vmem:[%s814_s9 + $0x8] sm:$0xff] %v395_v50 }

</bundles_post_ra>
